<compile_context>
chip_gen: v6e
topology: v6e:2x2x1
jax: 0.10.0
libtpu: 0.0.40
codegen_flags: <defaults>
</compile_context>

<pallas_src>
import functools

import jax
import jax.numpy as jnp
from jax.experimental import pallas as pl
from jax.experimental.pallas import tpu as pltpu


# --------------------------------------------------------------------------- #
# Tiling helpers
# --------------------------------------------------------------------------- #
_LANE = 128
_CHUNK_ROWS = 512                 # rows per in-kernel compute chunk
_TILE_BUDGET_BYTES = 12 << 20     # VMEM bytes per (logits + labels) buffer set
_MAX_TILE_BYTES = 24 << 20        # huge-C guard: above this fall back to XLA


def _round_up(x: int, m: int) -> int:
    return (x + m - 1) // m * m


def _row_align(itemsize: int) -> int:
    # sublane packing: 8 rows for 4-byte, 16 for 2-byte, 32 for 1-byte dtypes
    return max(8, 32 // max(1, itemsize))


def _per_row_vmem_bytes(num_classes: int, itemsize: int) -> int:
    # logits row is lane-padded to >=128 lanes in VMEM; labels column pads to 128 lanes
    lanes = max(_LANE, _round_up(num_classes, _LANE))
    return lanes * itemsize + _LANE * 4


def _pick_tile(batch: int, num_classes: int, itemsize: int):
    """Return (rows_per_dma_tile, rows_per_compute_chunk) or None if not viable."""
    align = _row_align(itemsize)
    per_row = _per_row_vmem_bytes(num_classes, itemsize)
    if per_row * align * 2 > _MAX_TILE_BYTES:      # pathologically large C
        return None
    rows = max(align, (_TILE_BUDGET_BYTES // per_row) // align * align)
    rows = min(rows, _round_up(batch, align))
    if rows > _CHUNK_ROWS:
        rows = (rows // _CHUNK_ROWS) * _CHUNK_ROWS
        chunk = _CHUNK_ROWS
    else:
        chunk = rows
    return rows, chunk


def _vmem_limit_bytes(tb: int, num_classes: int, itemsize: int) -> int:
    lanes = max(_LANE, _round_up(num_classes, _LANE))
    need = 2 * (tb * lanes * itemsize + tb * _LANE * 4)   # double-buffered logits + labels
    need += 8 * lanes * 4                                  # resident class-weight row
    need += 12 << 20                                       # Mosaic internal-scratch headroom
    return int(min(max(need, 32 << 20), 48 << 20))


# --------------------------------------------------------------------------- #
# Kernels
# --------------------------------------------------------------------------- #
def _row_chunk_stats(logits_ref, labels_ref, r0, rc):
    """NLL, one-hot and labels for rows [r0, r0+rc) of the current tile."""
    x = logits_ref[0, pl.ds(r0, rc), :].astype(jnp.float32)    # (rc, C)
    t = labels_ref[0, pl.ds(r0, rc), :]                        # (rc, 1) int32
    m = jnp.max(x, axis=-1, keepdims=True)
    lse = jnp.log(jnp.sum(jnp.exp(x - m), axis=-1, keepdims=True)) + m
    col = jax.lax.broadcasted_iota(jnp.int32, x.shape, 1)
    onehot = (col == t).astype(jnp.float32)                    # padded rows (t = -1) -> all zero
    tgt = jnp.sum(x * onehot, axis=-1, keepdims=True)
    return lse - tgt, onehot, t


def _weighted_ce_kernel(logits_ref, labels_ref, w_ref, loss_ref, wsum_ref, *, rc, n_chunks):
    k = pl.program_id(2)

    @pl.when(k == 0)
    def _init():
        loss_ref[...] = jnp.zeros_like(loss_ref)
        wsum_ref[...] = jnp.zeros_like(wsum_ref)

    w = w_ref[...].astype(jnp.float32)                         # (1, C), resident in VMEM

    def body(c, carry):
        loss_p, wsum_p = carry
        r0 = pl.multiple_of(c * rc, rc)
        nll, onehot, _ = _row_chunk_stats(logits_ref, labels_ref, r0, rc)
        w_row = jnp.sum(w * onehot, axis=-1, keepdims=True)    # (rc, 1)
        loss_p = loss_p + jnp.sum(w_row * nll, axis=0, keepdims=True)
        wsum_p = wsum_p + jnp.sum(w_row, axis=0, keepdims=True)
        return loss_p, wsum_p

    zero = jnp.zeros((1, 1), jnp.float32)
    loss_p, wsum_p = jax.lax.fori_loop(0, n_chunks, body, (zero, zero))
    loss_ref[...] += loss_p.reshape(loss_ref.shape)
    wsum_ref[...] += wsum_p.reshape(wsum_ref.shape)


def _unweighted_ce_kernel(logits_ref, labels_ref, loss_ref, *, rc, n_chunks):
    k = pl.program_id(2)

    @pl.when(k == 0)
    def _init():
        loss_ref[...] = jnp.zeros_like(loss_ref)

    def body(c, loss_p):
        r0 = pl.multiple_of(c * rc, rc)
        nll, _, t = _row_chunk_stats(logits_ref, labels_ref, r0, rc)
        valid = (t >= 0).astype(jnp.float32)                   # masks only padded rows
        return loss_p + jnp.sum(valid * nll, axis=0, keepdims=True)

    loss_p = jax.lax.fori_loop(0, n_chunks, body, jnp.zeros((1, 1), jnp.float32))
    loss_ref[...] += loss_p.reshape(loss_ref.shape)


# --------------------------------------------------------------------------- #
# Fused multi-task cross entropy (one pallas_call per group of same-shape tasks)
# --------------------------------------------------------------------------- #
def _fused_cross_entropy_pallas(logits, labels, class_weights):
    """logits: (T, B, C); labels: (T, B) int.  Returns per-task mean CE, shape (T,)."""
    T, B, C = logits.shape
    itemsize = jnp.dtype(logits.dtype).itemsize
    tb, rc = _pick_tile(B, C, itemsize)
    n_chunks = tb // rc

    n_tiles = pl.cdiv(B, tb)
    # Give v7x's two TensorCores parallel work even for a single task by splitting
    # the batch reduction in two; both the task and split axes are "parallel".
    S = 2 if (T == 1 and n_tiles >= 2) else 1
    K = pl.cdiv(n_tiles, S)
    Bp = S * K * tb

    if Bp != B:
        logits = jnp.pad(logits, ((0, 0), (0, Bp - B), (0, 0)))
        labels = jnp.pad(labels, ((0, 0), (0, Bp - B)), constant_values=-1)
    labels = labels.astype(jnp.int32).reshape(T, Bp, 1)

    logits_spec = pl.BlockSpec((1, tb, C), lambda t, s, k, K=K: (t, s * K + k, 0))
    labels_spec = pl.BlockSpec((1, tb, 1), lambda t, s, k, K=K: (t, s * K + k, 0))
    out_spec = pl.BlockSpec((1, 1, 1, 1), lambda t, s, k: (t, s, 0, 0))
    acc_shape = jax.ShapeDtypeStruct((T, S, 1, 1), jnp.float32)

    compiler_params = pltpu.CompilerParams(
        dimension_semantics=("parallel", "parallel", "arbitrary"),
        vmem_limit_bytes=_vmem_limit_bytes(tb, C, itemsize),
    )
    cost = pl.CostEstimate(
        flops=int(6 * T * Bp * C),
        transcendentals=int(T * Bp * C),
        bytes_accessed=int(T * Bp * (C * itemsize + 4) + C * 4 + T * S * 8),
    )

    if class_weights is None:
        loss_sums = pl.pallas_call(
            functools.partial(_unweighted_ce_kernel, rc=rc, n_chunks=n_chunks),
            out_shape=acc_shape,
            grid_spec=pltpu.PrefetchScalarGridSpec(
                num_scalar_prefetch=0,
                grid=(T, S, K),
                in_specs=[logits_spec, labels_spec],
                out_specs=out_spec,
            ),
            compiler_params=compiler_params,
            cost_estimate=cost,
        )(logits, labels)
        return jnp.sum(loss_sums, axis=(1, 2, 3)) / jnp.float32(B)

    w_row = class_weights.astype(jnp.float32).reshape(1, C)
    w_spec = pl.BlockSpec((1, C), lambda t, s, k: (0, 0))      # resident: DMA'd once
    loss_sums, weight_sums = pl.pallas_call(
        functools.partial(_weighted_ce_kernel, rc=rc, n_chunks=n_chunks),
        out_shape=(acc_shape, acc_shape),
        grid_spec=pltpu.PrefetchScalarGridSpec(
            num_scalar_prefetch=0,
            grid=(T, S, K),
            in_specs=[logits_spec, labels_spec, w_spec],
            out_specs=[out_spec, out_spec],
        ),
        compiler_params=compiler_params,
        cost_estimate=cost,
    )(logits, labels, w_row)
    # weighted-mean reduction; an all-zero weight draw gives NaN, matching torch.
    return jnp.sum(loss_sums, axis=(1, 2, 3)) / jnp.sum(weight_sums, axis=(1, 2, 3))


def _cross_entropy_xla(logits, labels, class_weights):
    """Small-batch / huge-C fast path: plain XLA, fuses into surrounding ops."""
    logp = jax.nn.log_softmax(logits.astype(jnp.float32), axis=-1)
    lab = labels.astype(jnp.int32)
    nll = -jnp.take_along_axis(logp, lab[:, None], axis=-1)[:, 0]
    if class_weights is None:
        return jnp.mean(nll)
    w = class_weights.astype(jnp.float32)[lab]
    return jnp.sum(w * nll) / jnp.sum(w)


# --------------------------------------------------------------------------- #
# MultiTaskLoss: dict bookkeeping stays as host-side glue (like the PyTorch loop)
# --------------------------------------------------------------------------- #
class MultiTaskLoss:
    def __init__(self, task_weights: dict, class_weights=None, *, min_kernel_rows: int = 1024):
        # min_kernel_rows: below this batch size the plain-XLA path is used
        # (kernel launch would be pure overhead).  Set 0 to always use the kernel.
        self.task_weights = dict(task_weights)
        self.class_weights = class_weights
        self.min_kernel_rows = min_kernel_rows

    def __call__(self, predictions: dict, targets: dict) -> dict:
        losses = {}
        total_loss = jnp.float32(0.0)
        matched = [(n, predictions[n], targets[n]) for n in predictions if n in targets]

        # Group tasks that share (shape, dtype) -> one fused pallas_call per group.
        groups, order = {}, []
        for name, lg, tg in matched:
            key = (tuple(lg.shape), jnp.dtype(lg.dtype))
            if key not in groups:
                groups[key] = []
                order.append(key)
            groups[key].append((name, lg, tg))

        task_losses = {}
        for key in order:
            items = groups[key]
            (B, C), dt = key
            viable = _pick_tile(B, C, jnp.dtype(dt).itemsize) is not None
            if (B < self.min_kernel_rows) or not viable:
                for name, lg, tg in items:
                    task_losses[name] = _cross_entropy_xla(lg, tg, self.class_weights)
            else:
                lstack = jnp.stack([lg for _, lg, _ in items])
                tstack = jnp.stack([tg for _, _, tg in items])
                per_task = _fused_cross_entropy_pallas(lstack, tstack, self.class_weights)
                for i, (name, _, _) in enumerate(items):
                    task_losses[name] = per_task[i]

        for name, _, _ in matched:   # preserve original task ordering in the dict
            task_loss = task_losses[name]
            losses[f"loss_{name}"] = task_loss
            total_loss = total_loss + self.task_weights.get(name, 1.0) * task_loss
        losses["total_loss"] = total_loss
        return losses


# --------------------------------------------------------------------------- #
# Demo + correctness checks
# --------------------------------------------------------------------------- #
if __name__ == "__main__":
    key = jax.random.PRNGKey(0)
    k1, k2, k3, k4, k5, k6, k7, k8 = jax.random.split(key, 8)

    # --- small multi-task case (weighted CE, fused 2-task kernel) ------------
    batch, num_classes = 8, 16
    predictions = {
        "task_a": jax.random.normal(k1, (batch, num_classes), dtype=jnp.float32),
        "task_b": jax.random.normal(k2, (batch, num_classes), dtype=jnp.float32),
        "task_c": jax.random.normal(k3, (batch, num_classes), dtype=jnp.float32),  # no target -> skipped
    }
    targets = {
        "task_a": jax.random.randint(k4, (batch,), 0, num_classes),
        "task_b": jax.random.randint(k5, (batch,), 0, num_classes),
    }
    class_weights = 0.5 + jax.random.uniform(k6, (num_classes,), dtype=jnp.float32)
    task_weights = {"task_a": 0.7, "task_b": 1.3}

    loss_fn = MultiTaskLoss(task_weights, class_weights, min_kernel_rows=0)  # force kernel path
    losses = jax.block_until_ready(loss_fn(predictions, targets))

    def ce_ref(logits, labels, w):
        logp = jax.nn.log_softmax(logits.astype(jnp.float32), axis=-1)
        nll = -jnp.take_along_axis(logp, labels[:, None], axis=-1)[:, 0]
        if w is None:
            return jnp.mean(nll)
        ww = w[labels]
        return jnp.sum(ww * nll) / jnp.sum(ww)

    total_ref = jnp.float32(0.0)
    for name in ("task_a", "task_b"):
        ref = ce_ref(predictions[name], targets[name], class_weights)
        assert jnp.allclose(losses[f"loss_{name}"], ref, atol=1e-5, rtol=1e-5), name
        total_ref = total_ref + task_weights[name] * ref
    assert "loss_task_c" not in losses
    assert jnp.allclose(losses["total_loss"], total_ref, atol=1e-5, rtol=1e-5)

    # --- medium single-task case (unweighted CE: exercises the chunked inner
    #     loop, batch padding and the 2-way "split" parallel axis) -------------
    B2, C2 = 2000, 32
    logits2 = jax.random.normal(k7, (B2, C2), dtype=jnp.float32)
    labels2 = jax.random.randint(k8, (B2,), 0, C2)
    losses2 = jax.block_until_ready(
        MultiTaskLoss({"cls": 1.0}, None)({"cls": logits2}, {"cls": labels2}))
    ref2 = ce_ref(logits2, labels2, None)
    assert jnp.allclose(losses2["loss_cls"], ref2, atol=1e-4, rtol=1e-4)
    assert jnp.allclose(losses2["total_loss"], ref2, atol=1e-4, rtol=1e-4)

    print("KERNEL_OK")
</pallas_src>

<mosaic_0001>
module attributes {stable_mosaic.version = 11 : i64} {
  func.func @_weighted_ce_kernel(%arg0: i32, %arg1: i32, %arg2: i32, %arg3: memref<1x8x16xf32, #tpu.memory_space<vmem>>, %arg4: memref<1x8x1xi32, #tpu.memory_space<vmem>>, %arg5: memref<1x16xf32, #tpu.memory_space<vmem>>, %arg6: memref<1x1x1x1xf32, #tpu.memory_space<vmem>>, %arg7: memref<1x1x1x1xf32, #tpu.memory_space<vmem>>) attributes {dimension_semantics = [#tpu.dimension_semantics<parallel>, #tpu.dimension_semantics<parallel>, #tpu.dimension_semantics<arbitrary>], iteration_bounds = array<i64: 2, 1, 1>, scalar_prefetch = 0 : i64, scratch_operands = 0 : i64, tpu.core_type = #tpu.core_type<tc>, window_params = [{transform_indices = @transform_0, window_bounds = array<i64: 1, 8, 16>}, {transform_indices = @transform_1, window_bounds = array<i64: 1, 8, 1>}, {pipeline_mode = #tpu.pipeline_mode<synchronous>, transform_indices = @transform_2, window_bounds = array<i64: 1, 16>}, {transform_indices = @transform_3, window_bounds = array<i64: 1, 1, 1, 1>}, {transform_indices = @transform_4, window_bounds = array<i64: 1, 1, 1, 1>}]} {
    %c0_i32 = arith.constant 0 : i32
    %0 = arith.cmpi eq, %arg2, %c0_i32 : i32
    %1 = arith.extui %0 : i1 to i32
    %c0_i32_0 = arith.constant 0 : i32
    %2 = arith.cmpi ne, %1, %c0_i32_0 : i32
    scf.if %2 {
      %cst_29 = arith.constant 0.000000e+00 : f32
      %50 = vector.broadcast %cst_29 : f32 to vector<1x1x1x1xf32>
      %c0_30 = arith.constant 0 : index
      %c0_31 = arith.constant 0 : index
      %c0_32 = arith.constant 0 : index
      %c0_33 = arith.constant 0 : index
      %51 = vector.load %arg6[%c0_30, %c0_31, %c0_32, %c0_33] : memref<1x1x1x1xf32, #tpu.memory_space<vmem>>, vector<1x1x1x1xf32>
      tpu.vector_store %arg6[%c0_30, %c0_31, %c0_32, %c0_33], %50 {strides = array<i32>} : memref<1x1x1x1xf32, #tpu.memory_space<vmem>>, vector<1x1x1x1xf32>,
      %cst_34 = arith.constant 0.000000e+00 : f32
      %52 = vector.broadcast %cst_34 : f32 to vector<1x1x1x1xf32>
      %c0_35 = arith.constant 0 : index
      %c0_36 = arith.constant 0 : index
      %c0_37 = arith.constant 0 : index
      %c0_38 = arith.constant 0 : index
      %53 = vector.load %arg7[%c0_35, %c0_36, %c0_37, %c0_38] : memref<1x1x1x1xf32, #tpu.memory_space<vmem>>, vector<1x1x1x1xf32>
      tpu.vector_store %arg7[%c0_35, %c0_36, %c0_37, %c0_38], %52 {strides = array<i32>} : memref<1x1x1x1xf32, #tpu.memory_space<vmem>>, vector<1x1x1x1xf32>,
    } else {
    }
    %c0 = arith.constant 0 : index
    %c0_1 = arith.constant 0 : index
    %3 = vector.load %arg5[%c0, %c0_1] : memref<1x16xf32, #tpu.memory_space<vmem>>, vector<1x16xf32>
    %cst = arith.constant 0.000000e+00 : f32
    %4 = vector.broadcast %cst : f32 to vector<1x1xf32>
    %c0_i32_2 = arith.constant 0 : i32
    %c8_i32 = arith.constant 8 : i32
    %5 = arith.muli %c0_i32_2, %c8_i32 : i32
    %6 = tpu.assume_multiple %5, 8 : i32
    %c0_3 = arith.constant 0 : index
    %7 = arith.index_cast %6 : i32 to index
    %c0_4 = arith.constant 0 : index
    %8 = vector.load %arg3[%c0_3, %7, %c0_4] : memref<1x8x16xf32, #tpu.memory_space<vmem>>, vector<1x8x16xf32>
    %9 = vector.shape_cast %8 : vector<1x8x16xf32> to vector<8x16xf32>
    %c0_5 = arith.constant 0 : index
    %10 = arith.index_cast %6 : i32 to index
    %c0_6 = arith.constant 0 : index
    %11 = vector.load %arg4[%c0_5, %10, %c0_6] : memref<1x8x1xi32, #tpu.memory_space<vmem>>, vector<1x8x1xi32>
    %12 = vector.shape_cast %11 : vector<1x8x1xi32> to vector<8x1xi32>
    %cst_7 = arith.constant dense<0xFF800000> : vector<8xf32>
    %13 = vector.multi_reduction <maximumf>, %9, %cst_7 [1] : vector<8x16xf32> to vector<8xf32>
    %14 = vector.shape_cast %13 : vector<8xf32> to vector<8x1xf32>
    %15 = vector.broadcast %14 : vector<8x1xf32> to vector<8x16xf32>
    %16 = arith.subf %9, %15 : vector<8x16xf32>
    %17 = math.exp %16 : vector<8x16xf32>
    %cst_8 = arith.constant dense<0.000000e+00> : vector<8xf32>
    %18 = vector.multi_reduction <add>, %17, %cst_8 [1] : vector<8x16xf32> to vector<8xf32>
    %19 = vector.shape_cast %18 : vector<8xf32> to vector<8x1xf32>
    %20 = math.log %19 : vector<8x1xf32>
    %21 = arith.addf %20, %14 : vector<8x1xf32>
    %22 = tpu.iota {dimensions = array<i32: 1>} : vector<8x16xi32>
    %23 = vector.broadcast %12 : vector<8x1xi32> to vector<8x16xi32>
    %24 = arith.cmpi eq, %22, %23 : vector<8x16xi32>
    %25 = arith.extui %24 : vector<8x16xi1> to vector<8x16xi32>
    %26 = arith.sitofp %25 : vector<8x16xi32> to vector<8x16xf32>
    %27 = arith.mulf %9, %26 : vector<8x16xf32>
    %cst_9 = arith.constant dense<0.000000e+00> : vector<8xf32>
    %28 = vector.multi_reduction <add>, %27, %cst_9 [1] : vector<8x16xf32> to vector<8xf32>
    %29 = vector.shape_cast %28 : vector<8xf32> to vector<8x1xf32>
    %30 = arith.subf %21, %29 : vector<8x1xf32>
    %31 = vector.broadcast %3 : vector<1x16xf32> to vector<8x16xf32>
    %32 = arith.mulf %31, %26 : vector<8x16xf32>
    %cst_10 = arith.constant dense<0.000000e+00> : vector<8xf32>
    %33 = vector.multi_reduction <add>, %32, %cst_10 [1] : vector<8x16xf32> to vector<8xf32>
    %34 = vector.shape_cast %33 : vector<8xf32> to vector<8x1xf32>
    %35 = arith.mulf %34, %30 : vector<8x1xf32>
    %cst_11 = arith.constant dense<0.000000e+00> : vector<1xf32>
    %36 = vector.multi_reduction <add>, %35, %cst_11 [0] : vector<8x1xf32> to vector<1xf32>
    %37 = vector.shape_cast %36 : vector<1xf32> to vector<1x1xf32>
    %38 = arith.addf %4, %37 : vector<1x1xf32>
    %cst_12 = arith.constant dense<0.000000e+00> : vector<1xf32>
    %39 = vector.multi_reduction <add>, %34, %cst_12 [0] : vector<8x1xf32> to vector<1xf32>
    %40 = vector.shape_cast %39 : vector<1xf32> to vector<1x1xf32>
    %41 = arith.addf %4, %40 : vector<1x1xf32>
    %c1_i32 = arith.constant 1 : i32
    %c0_13 = arith.constant 0 : index
    %c0_14 = arith.constant 0 : index
    %c0_15 = arith.constant 0 : index
    %c0_16 = arith.constant 0 : index
    %42 = vector.load %arg6[%c0_13, %c0_14, %c0_15, %c0_16] : memref<1x1x1x1xf32, #tpu.memory_space<vmem>>, vector<1x1x1x1xf32>
    %43 = vector.shape_cast %38 : vector<1x1xf32> to vector<1x1x1x1xf32>
    %44 = arith.addf %42, %43 : vector<1x1x1x1xf32>
    %c0_17 = arith.constant 0 : index
    %c0_18 = arith.constant 0 : index
    %c0_19 = arith.constant 0 : index
    %c0_20 = arith.constant 0 : index
    %45 = vector.load %arg6[%c0_17, %c0_18, %c0_19, %c0_20] : memref<1x1x1x1xf32, #tpu.memory_space<vmem>>, vector<1x1x1x1xf32>
    tpu.vector_store %arg6[%c0_17, %c0_18, %c0_19, %c0_20], %44 {strides = array<i32>} : memref<1x1x1x1xf32, #tpu.memory_space<vmem>>, vector<1x1x1x1xf32>,
    %c0_21 = arith.constant 0 : index
    %c0_22 = arith.constant 0 : index
    %c0_23 = arith.constant 0 : index
    %c0_24 = arith.constant 0 : index
    %46 = vector.load %arg7[%c0_21, %c0_22, %c0_23, %c0_24] : memref<1x1x1x1xf32, #tpu.memory_space<vmem>>, vector<1x1x1x1xf32>
    %47 = vector.shape_cast %41 : vector<1x1xf32> to vector<1x1x1x1xf32>
    %48 = arith.addf %46, %47 : vector<1x1x1x1xf32>
    %c0_25 = arith.constant 0 : index
    %c0_26 = arith.constant 0 : index
    %c0_27 = arith.constant 0 : index
    %c0_28 = arith.constant 0 : index
    %49 = vector.load %arg7[%c0_25, %c0_26, %c0_27, %c0_28] : memref<1x1x1x1xf32, #tpu.memory_space<vmem>>, vector<1x1x1x1xf32>
    tpu.vector_store %arg7[%c0_25, %c0_26, %c0_27, %c0_28], %48 {strides = array<i32>} : memref<1x1x1x1xf32, #tpu.memory_space<vmem>>, vector<1x1x1x1xf32>,
    return
  }
  func.func @transform_0(%arg0: i32, %arg1: i32, %arg2: i32) -> (i32, i32, i32) {
    %c1_i32 = arith.constant 1 : i32
    %0 = arith.muli %arg1, %c1_i32 : i32
    %1 = arith.addi %0, %arg2 : i32
    %c0_i32 = arith.constant 0 : i32
    %c0_i32_0 = arith.constant 0 : i32
    return %arg0, %1, %c0_i32 : i32, i32, i32
  }
  func.func @transform_1(%arg0: i32, %arg1: i32, %arg2: i32) -> (i32, i32, i32) {
    %c1_i32 = arith.constant 1 : i32
    %0 = arith.muli %arg1, %c1_i32 : i32
    %1 = arith.addi %0, %arg2 : i32
    %c0_i32 = arith.constant 0 : i32
    %c0_i32_0 = arith.constant 0 : i32
    return %arg0, %1, %c0_i32 : i32, i32, i32
  }
  func.func @transform_2(%arg0: i32, %arg1: i32, %arg2: i32) -> (i32, i32) {
    %c0_i32 = arith.constant 0 : i32
    %c0_i32_0 = arith.constant 0 : i32
    %c0_i32_1 = arith.constant 0 : i32
    return %c0_i32, %c0_i32_0 : i32, i32
  }
  func.func @transform_3(%arg0: i32, %arg1: i32, %arg2: i32) -> (i32, i32, i32, i32) {
    %c0_i32 = arith.constant 0 : i32
    %c0_i32_0 = arith.constant 0 : i32
    %c0_i32_1 = arith.constant 0 : i32
    return %arg0, %arg1, %c0_i32, %c0_i32_0 : i32, i32, i32, i32
  }
  func.func @transform_4(%arg0: i32, %arg1: i32, %arg2: i32) -> (i32, i32, i32, i32) {
    %c0_i32 = arith.constant 0 : i32
    %c0_i32_0 = arith.constant 0 : i32
    %c0_i32_1 = arith.constant 0 : i32
    return %arg0, %arg1, %c0_i32, %c0_i32_0 : i32, i32, i32, i32
  }
}

</mosaic_0001>

<bundles_post_ra>
// kernel: tpu_custom_call.1
= control target key start
LH: loop header
LB: loop body
LE: loop exit
PB: predicated region body
PF: predicated region fallthrough
CT: control target
= control target key end

     0   :  { %s570_s15 = smov 0   ;;  %s572_s16 = smov 0   ;;  %s630_s0 = inlined_call_operand.vmem [shape: f32[2,8,16], index: 0, kind: input, shape index: {}]   ;;  %s631_s1 = inlined_call_operand.vmem [shape: s32[2,8,1], index: 1, kind: input, shape index: {}]   ;;  %s632_s2 = inlined_call_operand.vmem [shape: f32[1,16], index: 2, kind: input, shape index: {}]   ;;  %s633_s3 = inlined_call_operand.vmem [shape: f32[2,1,1,1], index: 3, kind: output, shape index: {0}]   ;;  %s634_s4 = inlined_call_operand.vmem [shape: f32[2,1,1,1], index: 4, kind: output, shape index: {1}]  }
   0x1   :  { %s574_s17 = smov 0  }
   0x2 LB: > { %s34_s18 = sadd.s32 1, %s537_s16  ;;  %p481_p0 = scmp.ge.s32.totalorder %s541_s17, 1  ;;  %s541_s17 = sphi %s574_s17, %s15_s17   ;;  %s537_s16 = sphi %s572_s16, %s636_s16   ;;  %s533_s15 = sphi %s570_s15, %s635_s15  }
   0x3   : > { %p36_p1 = scmp.ge.s32.totalorder %s34_s18, 2  ;;  %p214_p2 = scmp.lt.s32.totalorder %s541_s17, 3 }
   0x5   : > { %s638_s18 = smov (%p36_p1, %s34_s18), 0  ;;  %p215_p3 = pnand %p481_p0, %p214_p2 }
   0x6   : > { %p259_p4 = scmp.lt.s32.totalorder (!%p215_p3), %s533_s15, 1 }
   0x7   : > { %218 = sbr.rel (%p215_p3) target bundleno = 349 (0x15d), region = 32 }
   0xc   : > { %v543_v0 = vmov 0   ;;  %s640_s15 = smov (!%p259_p4, %s533_s15), 1  ;;  %vm298_vm0 = vcmask 130048   ;;  %vm292_vm1 = vcmask 0   ;;  %v544_v4 = vmov 0.0  }
   0xd   : > { %514 = vset.pattern.permute.xlu0 %v543_v0  ;;  %s482_s19 = sshll.u32 %s640_s15, 3  ;;  %s598_s28 = scalar_lea.vmem %s633_s3, %s640_s15  ;;  %v311_v8 = vlaneseq  ;;  %v485_v14 = vld [vmem:[%s632_s2] ss:$0 sm:$0xff] }
   0xe   : > { %s265_s22 = scalar_lea.vmem %s630_s0, %s482_s19  ;;  %s274_s25 = scalar_lea.vmem %s631_s1, %s482_s19  ;;  %293 = vst.msk [vmem:[%s598_s28] sm:$0x1] %vm292_vm1, %v544_v4 }
   0xf   : > { %v296_v1 = vld [vmem:[%s265_s22] sm:$0xff]  ;;  %s603_s5 = scalar_lea.vmem %s634_s4, %s640_s15  ;;  %v312_v9 = vand.u32 127, %v311_v8 }
  0x10   : > { %v299_v2 = vsel %vm298_vm0, %v296_v1, -inf  ;;  %v297_v3 = vld [vmem:[%s274_s25] sm:$0xff]  ;;  %294 = vst.msk [vmem:[%s603_s5] sm:$0x1] %vm292_vm1, %v544_v4 }
  0x11   : > { %300 = vmax.xlane.f32.xlu0 %v299_v2 }
  0x15   : > { %v349_v40 = vld [vmem:[%s598_s28] sm:$0x1] }
  0x17   : > { %v353_v30 = vld [vmem:[%s603_s5] sm:$0x1] }
  0x27   : > { %314 = vperm.xlu0 %514, %v297_v3  }
  0x9a   : > { %v301_v5 = vpop.xlane.xlu0 %300 }
  0x9b   : > { %v302_v6 = vsub.f32 %v296_v1, %v301_v5 }
  0x9d   : > { %v303_v7 = vmul.f32 1.442695, %v302_v6 }
  0x9f   : > { %515 = vpow2.f32 %v303_v7 }
  0xa2   : > { %v315_v10 = vpop.permute.xlu0 %314 }
  0xa3   : > { %vm316_vm2 = vcmp.eq.s32.totalorder %v312_v9, %v315_v10 }
  0xa4   : > { %v484_v11 = vsel %vm316_vm2, 1.0, %v544_v4 }
  0xa5   : > { %v319_v12 = vmul.f32 %v484_v11, %v296_v1  ;;  %v330_v17 = vmul.f32 %v485_v14, %v484_v11 }
  0xa7   : > { %v320_v16 = vsel %vm298_vm0, %v319_v12, 0.0  ;;  %v331_v18 = vsel %vm298_vm0, %v330_v17, 0.0 }
  0xac   : > { %v516_v13 = vpop.eup %515 }
  0xad   : > { %v305_v15 = vsel %vm298_vm0, %v516_v13, 0.0 }
  0xae   : > { %306 = vadd.xlane.f32.xlu1 %v305_v15 }
  0xb2   : > { %321 = vadd.xlane.f32.xlu1 %v320_v16 }
  0xb6   : > { %332 = vadd.xlane.f32.xlu1 %v331_v18 }
 0x137   : > { %v307_v19 = vpop.xlane.xlu1 %306 }
 0x138   : > { %517 = vlog2.f32 %v307_v19 }
 0x13b   : > { %v322_v20 = vpop.xlane.xlu1 %321 }
 0x13f   : > { %v333_v21 = vpop.xlane.xlu1 %332 }
 0x140   : > { %v342_v22 = vrot.slane %v333_v21, 4 }
 0x142   : > { %v343_v23 = vadd.f32 %v342_v22, %v333_v21 }
 0x144   : > { %v344_v24 = vrot.slane %v343_v23, 2 }
 0x145   : > { %v518_v25 = vpop.eup %517 }
 0x146   : > { %v309_v26 = vmul.f32 0.6931472, %v518_v25  ;;  %v345_v27 = vadd.f32 %v344_v24, %v343_v23 }
 0x148   : > { %v310_v28 = vadd.f32 %v309_v26, %v301_v5  ;;  %v346_v29 = vrot.slane %v345_v27, 1 }
 0x14a   : > { %v323_v31 = vsub.f32 %v310_v28, %v322_v20  ;;  %v347_v32 = vadd.f32 %v346_v29, %v345_v27 }
 0x14c   : > { %v334_v33 = vmul.f32 %v333_v21, %v323_v31  ;;  %v354_v34 = vadd.f32 %v353_v30, %v347_v32 }
 0x14e   : > { %v335_v35 = vrot.slane %v334_v33, 4  ;;  %355 = vst.msk [vmem:[%s603_s5] sm:$0x1] %vm292_vm1, %v354_v34 }
 0x150   : > { %v336_v36 = vadd.f32 %v335_v35, %v334_v33 }
 0x152   : > { %v337_v37 = vrot.slane %v336_v36, 2 }
 0x154   : > { %v338_v38 = vadd.f32 %v337_v37, %v336_v36 }
 0x156   : > { %v339_v39 = vrot.slane %v338_v38, 1 }
 0x158   : > { %v340_v41 = vadd.f32 %v339_v39, %v338_v38 }
 0x15a   : > { %v350_v42 = vadd.f32 %v349_v40, %v340_v41 }
 0x15c   : > { %352 = vst.msk [vmem:[%s598_s28] sm:$0x1] %vm292_vm1, %v350_v42 }
 0x15d PF: > { %s15_s17 = sadd.s32 1, %s541_s17   ;;  %s635_s15 = smov %s537_s16 }
 0x15e   : > { %p12_p5 = scmp.ge.s32.totalorder %s15_s17, 4   ;;  %s636_s16 = smov %s638_s18 }
 0x160   :  { %14 = sbr.rel (!%p12_p5) target bundleno = 2 (0x2), region = 81 }

</bundles_post_ra>
